<compile_context>
chip_gen: v7x
topology: tpu7x:2x2x1
jax: 0.10.0
libtpu: 0.0.40
codegen_flags: <defaults>
</compile_context>

<pallas_src>
import functools

import jax
import jax.numpy as jnp
from jax import lax
from jax.experimental import pallas as pl
from jax.experimental.pallas import tpu as pltpu


def _label_smooth_kernel(preds_ref, tgt_ref, out_ref, acc_ref, *,
                         lb_pos, lb_neg, n_total, tile_n, size_average):
    """Per-tile: streaming logsumexp + smoothed-label weighting, scalar accum."""
    i = pl.program_id(0)

    @pl.when(i == 0)
    def _init():
        acc_ref[...] = jnp.zeros_like(acc_ref)

    x = preds_ref[...].astype(jnp.float32)                 # [tile_n, C]
    tn, c = x.shape

    # logsumexp along the class axis (dim=1); log_softmax = x - (m + lse)
    m = jnp.max(x, axis=1, keepdims=True)                  # [tile_n, 1]
    lse = jnp.log(jnp.sum(jnp.exp(x - m), axis=1, keepdims=True))
    norm = m + lse                                         # [tile_n, 1]

    # row_sum of log_softmax without materializing it
    row_sum_logp = jnp.sum(x, axis=1, keepdims=True) - jnp.float32(c) * norm

    # target logit via lane-iota select (no dense one-hot tensor)
    col_ids = lax.broadcasted_iota(jnp.int32, (tn, c), 1)
    x_tgt = jnp.sum(jnp.where(col_ids == tgt_ref[...], x, 0.0),
                    axis=1, keepdims=True)                 # [tile_n, 1]
    logp_tgt = x_tgt - norm

    per_sample = -((lb_pos - lb_neg) * logp_tgt + lb_neg * row_sum_logp)

    # Mask rows of the (possibly partial) last tile.
    row_ids = i * tile_n + lax.broadcasted_iota(jnp.int32, (tn, 1), 0)
    per_sample = jnp.where(row_ids < n_total, per_sample, 0.0)

    acc_ref[...] += jnp.sum(per_sample, axis=0, keepdims=True)   # [1, 1]

    @pl.when(i == pl.num_programs(0) - 1)
    def _finalize():
        total = acc_ref[...]
        if size_average == 'mean':
            total = total / jnp.float32(n_total)           # applied exactly once
        out_ref[...] = total


def _choose_tile_n(n, c, itemsize):
    """Largest batch tile that keeps 2x double-buffered preds tiles <= ~16 MiB."""
    budget = 16 * 1024 * 1024
    max_rows = max(8, budget // (2 * c * itemsize))
    tile = min(n, 1024, max_rows)
    if tile < n:
        tile = max(8, (tile // 8) * 8)     # (8, 128) sublane constraint
    return tile


def label_smooth_entropy(preds, targets, *, smooth=0.1, size_average='mean'):
    """Pallas implementation of LabelSmoothEntropy.forward (class_weights=None)."""
    if size_average not in ('mean', 'sum'):
        raise NotImplementedError
    n, c = preds.shape
    lb_pos = 1.0 - smooth
    lb_neg = smooth / (n - 1)              # faithful to the PyTorch code (batch-1)

    tile_n = _choose_tile_n(n, c, jnp.dtype(preds.dtype).itemsize)
    grid = (pl.cdiv(n, tile_n),)

    tgt2d = targets.astype(jnp.int32).reshape(n, 1)

    kernel = functools.partial(
        _label_smooth_kernel, lb_pos=lb_pos, lb_neg=lb_neg,
        n_total=n, tile_n=tile_n, size_average=size_average)

    cost = pl.CostEstimate(
        flops=5 * n * c,
        transcendentals=n * c,
        bytes_accessed=n * c * jnp.dtype(preds.dtype).itemsize + n * 4 + 4)

    out = pl.pallas_call(
        kernel,
        out_shape=jax.ShapeDtypeStruct((1, 1), jnp.float32),
        grid_spec=pltpu.PrefetchScalarGridSpec(
            num_scalar_prefetch=0,
            grid=grid,
            in_specs=[
                pl.BlockSpec((tile_n, c), lambda i: (i, 0)),   # streaming preds
                pl.BlockSpec((tile_n, 1), lambda i: (i, 0)),   # targets column
            ],
            out_specs=pl.BlockSpec((1, 1), lambda i: (0, 0)),  # resident output
            scratch_shapes=[pltpu.VMEM((1, 1), jnp.float32)],  # loss accumulator
        ),
        compiler_params=pltpu.CompilerParams(
            dimension_semantics=("arbitrary",),                # reduction axis
            vmem_limit_bytes=32 * 1024 * 1024),
        cost_estimate=cost,
    )(preds, tgt2d)
    return out[0, 0]


def _reference(preds, targets, *, smooth=0.1, size_average='mean'):
    """Pure-JAX reference mirroring the PyTorch forward exactly."""
    n, c = preds.shape
    lb_pos = 1.0 - smooth
    lb_neg = smooth / (n - 1)
    one_hot = jax.nn.one_hot(targets, c, dtype=jnp.float32)
    smoothed = one_hot * lb_pos + (1.0 - one_hot) * lb_neg
    log_soft = jax.nn.log_softmax(preds.astype(jnp.float32), axis=1)
    loss = (-log_soft * smoothed).sum(axis=1)
    return loss.mean() if size_average == 'mean' else loss.sum()


if __name__ == "__main__":
    key = jax.random.PRNGKey(0)
    k1, k2 = jax.random.split(key)
    N, C = 8, 32                      # small: batch=8, num_classes=32
    preds = jax.random.normal(k1, (N, C), dtype=jnp.float32)
    targets = jax.random.randint(k2, (N,), 0, C, dtype=jnp.int32)

    out = label_smooth_entropy(preds, targets, smooth=0.1, size_average='mean')
    out = jax.block_until_ready(out)

    ref = _reference(preds, targets, smooth=0.1, size_average='mean')
    assert jnp.allclose(out, ref, atol=1e-5, rtol=1e-5), (out, ref)

    # also exercise the 'sum' reduction path
    out_s = jax.block_until_ready(
        label_smooth_entropy(preds, targets, smooth=0.1, size_average='sum'))
    ref_s = _reference(preds, targets, smooth=0.1, size_average='sum')
    assert jnp.allclose(out_s, ref_s, atol=1e-5, rtol=1e-5), (out_s, ref_s)

    print("KERNEL_OK")
</pallas_src>

<mosaic_0001>
module attributes {stable_mosaic.version = 11 : i64} {
  func.func @_label_smooth_kernel(%arg0: i32, %arg1: memref<8x32xf32, #tpu.memory_space<vmem>>, %arg2: memref<8x1xi32, #tpu.memory_space<vmem>>, %arg3: memref<1x1xf32, #tpu.memory_space<vmem>>, %arg4: memref<1x1xf32, #tpu.memory_space<vmem>>) attributes {dimension_semantics = [#tpu.dimension_semantics<arbitrary>], iteration_bounds = array<i64: 1>, scalar_prefetch = 0 : i64, scratch_operands = 1 : i64, tpu.core_type = #tpu.core_type<tc>, window_params = [{transform_indices = @transform_0, window_bounds = array<i64: 8, 32>}, {transform_indices = @transform_1, window_bounds = array<i64: 8, 1>}, {pipeline_mode = #tpu.pipeline_mode<synchronous>, transform_indices = @transform_2, window_bounds = array<i64: 1, 1>}]} {
    %c0_i32 = arith.constant 0 : i32
    %0 = arith.cmpi eq, %arg0, %c0_i32 : i32
    %1 = arith.extui %0 : i1 to i32
    %c0_i32_0 = arith.constant 0 : i32
    %2 = arith.cmpi ne, %1, %c0_i32_0 : i32
    scf.if %2 {
      %cst_21 = arith.constant 0.000000e+00 : f32
      %50 = vector.broadcast %cst_21 : f32 to vector<1x1xf32>
      %c0_22 = arith.constant 0 : index
      %c0_23 = arith.constant 0 : index
      %51 = vector.load %arg4[%c0_22, %c0_23] : memref<1x1xf32, #tpu.memory_space<vmem>>, vector<1x1xf32>
      tpu.vector_store %arg4[%c0_22, %c0_23], %50 {strides = array<i32>} : memref<1x1xf32, #tpu.memory_space<vmem>>, vector<1x1xf32>,
    } else {
    }
    %c0 = arith.constant 0 : index
    %c0_1 = arith.constant 0 : index
    %3 = vector.load %arg1[%c0, %c0_1] : memref<8x32xf32, #tpu.memory_space<vmem>>, vector<8x32xf32>
    %cst = arith.constant dense<0xFF800000> : vector<8xf32>
    %4 = vector.multi_reduction <maximumf>, %3, %cst [1] : vector<8x32xf32> to vector<8xf32>
    %5 = vector.shape_cast %4 : vector<8xf32> to vector<8x1xf32>
    %6 = vector.broadcast %5 : vector<8x1xf32> to vector<8x32xf32>
    %7 = arith.subf %3, %6 : vector<8x32xf32>
    %8 = math.exp %7 : vector<8x32xf32>
    %cst_2 = arith.constant dense<0.000000e+00> : vector<8xf32>
    %9 = vector.multi_reduction <add>, %8, %cst_2 [1] : vector<8x32xf32> to vector<8xf32>
    %10 = vector.shape_cast %9 : vector<8xf32> to vector<8x1xf32>
    %11 = math.log %10 : vector<8x1xf32>
    %12 = arith.addf %5, %11 : vector<8x1xf32>
    %cst_3 = arith.constant dense<0.000000e+00> : vector<8xf32>
    %13 = vector.multi_reduction <add>, %3, %cst_3 [1] : vector<8x32xf32> to vector<8xf32>
    %14 = vector.shape_cast %13 : vector<8xf32> to vector<8x1xf32>
    %cst_4 = arith.constant 3.200000e+01 : f32
    %15 = vector.broadcast %cst_4 : f32 to vector<8x1xf32>
    %16 = arith.mulf %15, %12 : vector<8x1xf32>
    %17 = arith.subf %14, %16 : vector<8x1xf32>
    %18 = tpu.iota {dimensions = array<i32: 1>} : vector<8x32xi32>
    %c0_5 = arith.constant 0 : index
    %c0_6 = arith.constant 0 : index
    %19 = vector.load %arg2[%c0_5, %c0_6] : memref<8x1xi32, #tpu.memory_space<vmem>>, vector<8x1xi32>
    %20 = vector.broadcast %19 : vector<8x1xi32> to vector<8x32xi32>
    %21 = arith.cmpi eq, %18, %20 : vector<8x32xi32>
    %cst_7 = arith.constant 0.000000e+00 : f32
    %22 = vector.broadcast %cst_7 : f32 to vector<8x32xf32>
    %23 = arith.select %21, %3, %22 : vector<8x32xi1>, vector<8x32xf32>
    %cst_8 = arith.constant dense<0.000000e+00> : vector<8xf32>
    %24 = vector.multi_reduction <add>, %23, %cst_8 [1] : vector<8x32xf32> to vector<8xf32>
    %25 = vector.shape_cast %24 : vector<8xf32> to vector<8x1xf32>
    %26 = arith.subf %25, %12 : vector<8x1xf32>
    %cst_9 = arith.constant 0.885714293 : f32
    %27 = vector.broadcast %cst_9 : f32 to vector<8x1xf32>
    %28 = arith.mulf %27, %26 : vector<8x1xf32>
    %cst_10 = arith.constant 0.0142857144 : f32
    %29 = vector.broadcast %cst_10 : f32 to vector<8x1xf32>
    %30 = arith.mulf %29, %17 : vector<8x1xf32>
    %31 = arith.addf %28, %30 : vector<8x1xf32>
    %cst_11 = arith.constant 0.000000e+00 : f32
    %32 = vector.broadcast %cst_11 : f32 to vector<8x1xf32>
    %33 = arith.subf %32, %31 : vector<8x1xf32>
    %c8_i32 = arith.constant 8 : i32
    %34 = arith.muli %arg0, %c8_i32 : i32
    %35 = tpu.iota {dimensions = array<i32: 0>} : vector<8x1xi32>
    %36 = vector.broadcast %34 : i32 to vector<8x1xi32>
    %37 = arith.addi %36, %35 : vector<8x1xi32>
    %c8_i32_12 = arith.constant 8 : i32
    %38 = vector.broadcast %c8_i32_12 : i32 to vector<8x1xi32>
    %39 = arith.cmpi slt, %37, %38 : vector<8x1xi32>
    %cst_13 = arith.constant 0.000000e+00 : f32
    %40 = vector.broadcast %cst_13 : f32 to vector<8x1xf32>
    %41 = arith.select %39, %33, %40 : vector<8x1xi1>, vector<8x1xf32>
    %c0_14 = arith.constant 0 : index
    %c0_15 = arith.constant 0 : index
    %42 = vector.load %arg4[%c0_14, %c0_15] : memref<1x1xf32, #tpu.memory_space<vmem>>, vector<1x1xf32>
    %cst_16 = arith.constant dense<0.000000e+00> : vector<1xf32>
    %43 = vector.multi_reduction <add>, %41, %cst_16 [0] : vector<8x1xf32> to vector<1xf32>
    %44 = vector.shape_cast %43 : vector<1xf32> to vector<1x1xf32>
    %45 = arith.addf %42, %44 : vector<1x1xf32>
    %c0_17 = arith.constant 0 : index
    %c0_18 = arith.constant 0 : index
    %46 = vector.load %arg4[%c0_17, %c0_18] : memref<1x1xf32, #tpu.memory_space<vmem>>, vector<1x1xf32>
    tpu.vector_store %arg4[%c0_17, %c0_18], %45 {strides = array<i32>} : memref<1x1xf32, #tpu.memory_space<vmem>>, vector<1x1xf32>,
    %c0_i32_19 = arith.constant 0 : i32
    %47 = arith.cmpi eq, %arg0, %c0_i32_19 : i32
    %48 = arith.extui %47 : i1 to i32
    %c0_i32_20 = arith.constant 0 : i32
    %49 = arith.cmpi ne, %48, %c0_i32_20 : i32
    scf.if %49 {
      %c0_21 = arith.constant 0 : index
      %c0_22 = arith.constant 0 : index
      %50 = vector.load %arg4[%c0_21, %c0_22] : memref<1x1xf32, #tpu.memory_space<vmem>>, vector<1x1xf32>
      %cst_23 = arith.constant 8.000000e+00 : f32
      %51 = vector.broadcast %cst_23 : f32 to vector<1x1xf32>
      %52 = arith.divf %50, %51 : vector<1x1xf32>
      %c0_24 = arith.constant 0 : index
      %c0_25 = arith.constant 0 : index
      %53 = vector.load %arg3[%c0_24, %c0_25] : memref<1x1xf32, #tpu.memory_space<vmem>>, vector<1x1xf32>
      tpu.vector_store %arg3[%c0_24, %c0_25], %52 {strides = array<i32>} : memref<1x1xf32, #tpu.memory_space<vmem>>, vector<1x1xf32>,
    } else {
    }
    return
  }
  func.func @transform_0(%arg0: i32) -> (i32, i32) {
    %c0_i32 = arith.constant 0 : i32
    %c0_i32_0 = arith.constant 0 : i32
    return %arg0, %c0_i32 : i32, i32
  }
  func.func @transform_1(%arg0: i32) -> (i32, i32) {
    %c0_i32 = arith.constant 0 : i32
    %c0_i32_0 = arith.constant 0 : i32
    return %arg0, %c0_i32 : i32, i32
  }
  func.func @transform_2(%arg0: i32) -> (i32, i32) {
    %c0_i32 = arith.constant 0 : i32
    %c0_i32_0 = arith.constant 0 : i32
    %c0_i32_1 = arith.constant 0 : i32
    return %c0_i32, %c0_i32_0 : i32, i32
  }
}

</mosaic_0001>

<bundles_post_ra>
// kernel: tpu_custom_call.1
= control target key start
LH: loop header
LB: loop body
LE: loop exit
PB: predicated region body
PF: predicated region fallthrough
CT: control target
= control target key end

     0   :  { %vm19_vm0 = vcmask 261120   ;;  %s166_s0 = inlined_call_operand.vmem [shape: f32[8,32], index: 0, kind: input, shape index: {}]   ;;  %s167_s1 = inlined_call_operand.vmem [shape: s32[8,1], index: 1, kind: input, shape index: {}]   ;;  %s168_s2 = inlined_call_operand.hbm [shape: f32[1,1], index: 2, kind: output, shape index: {}]  }
   0x1   :  { %v18_v0 = vld [vmem:[%s166_s0] sm:$0xff] }
   0x2   :  { %7 = vsyncpa [#allocation4], 0  ;;  %v20_v1 = vsel %vm19_vm0, %v18_v0, -inf  ;;  %v123_v2 = vmov 0   ;;  %v39_v3 = vld [vmem:[%s167_s1] sm:$0xff]  ;;  %v37_v7 = vlaneseq  ;;  %v32_v12 = vsel %vm19_vm0, %v18_v0, 0.0 }
   0x3   :  { %94 = vset.pattern.permute.xlu0 %v123_v2  ;;  %vm16_vm2 = vcmask 0   ;;  %v124_v15 = vmov 0.0   ;;  %s125_s0 = smov [#allocation3]  }
   0x4   :  { %21 = vmax.xlane.f32.xlu0 %v20_v1  ;;  %v38_v8 = vand.u32 127, %v37_v7  ;;  %17 = vst.msk [vmem:[#allocation2] sm:$0x1] %vm16_vm2, %v124_v15  ;;  %s83_s1 = sshll.u32 %s125_s0, 4  ;;  %s84_s1 = int_to_ptr.vmem [resolvable:$true] %s83_s1 }
   0x5   :  { %s99_s13 = scalar_lea.vmem %s84_s1, 16  ;;  %s103_s14 = scalar_lea.vmem %s84_s1, 32 }
   0x6   :  { %p100_p0 = scmp.ne.s32.totalorder %s84_s1, %s99_s13  ;;  %p104_p1 = scmp.lt.s32.totalorder %s84_s1, %s84_s1 }
   0x7   :  { %p105_p2 = scmp.lt.s32.totalorder %s103_s14, %s99_s13 }
   0x9   :  { %p106_p3 = por %p105_p2, %p104_p1 }
   0xb   :  { %v60_v34 = vld [vmem:[#allocation2] sm:$0x1]  ;;  %p107_p4 = pnand %p106_p3, %p100_p0 }
  0x1a   :  { %41 = vperm.xlu0 %94, %v39_v3  }
  0x91   :  { %v22_v4 = vpop.xlane.xlu0 %21 }
  0x92   :  { %v23_v5 = vsub.f32 %v18_v0, %v22_v4 }
  0x94   :  { %v24_v6 = vmul.f32 1.442695, %v23_v5 }
  0x96   :  { %95 = vpow2.f32 %v24_v6 }
  0x99   :  { %v42_v9 = vpop.permute.xlu0 %41 }
  0x9a   :  { %vm43_vm1 = vcmp.eq.s32.totalorder %v38_v8, %v42_v9 }
  0x9b   :  { %v44_v13 = vsel %vm43_vm1, %v18_v0, 0.0 }
  0x9c   :  { %v45_v14 = vsel %vm19_vm0, %v44_v13, 0.0 }
  0xa0   :  { %v96_v10 = vpop.eup %95 }
  0xa1   :  { %v26_v11 = vsel %vm19_vm0, %v96_v10, 0.0 }
  0xa2   :  { %27 = vadd.xlane.f32.xlu1 %v26_v11 }
  0xa6   :  { %33 = vadd.xlane.f32.xlu1 %v32_v12 }
  0xaa   :  { %46 = vadd.xlane.f32.xlu1 %v45_v14 }
 0x12f   :  { %v28_v16 = vpop.xlane.xlu1 %27 }
 0x130   :  { %97 = vlog2.f32 %v28_v16 }
 0x133   :  { %v34_v17 = vpop.xlane.xlu1 %33 }
 0x137   :  { %v47_v20 = vpop.xlane.xlu1 %46 }
 0x13a   :  { %v98_v18 = vpop.eup %97 }
 0x13b   :  { %v30_v19 = vmul.f32 0.6931472, %v98_v18 }
 0x13d   :  { %v31_v21 = vadd.f32 %v30_v19, %v22_v4 }
 0x13f   :  { %v35_v22 = vmul.f32 32.0, %v31_v21  ;;  %v48_v23 = vsub.f32 %v47_v20, %v31_v21 }
 0x141   :  { %v36_v24 = vsub.f32 %v34_v17, %v35_v22  ;;  %v49_v26 = vmul.f32 0.8857143, %v48_v23 }
 0x143   :  { %v50_v25 = vmul.f32 0.014285714, %v36_v24 }
 0x145   :  { %v51_v27 = vadd.f32 %v50_v25, %v49_v26 }
 0x147   :  { %v52_v28 = vsub.f32 0.0, %v51_v27 }
 0x149   :  { %v61_v29 = vrot.slane %v52_v28, 4 }
 0x14b   :  { %v62_v30 = vadd.f32 %v61_v29, %v52_v28 }
 0x14d   :  { %v63_v31 = vrot.slane %v62_v30, 2 }
 0x14f   :  { %v64_v32 = vadd.f32 %v63_v31, %v62_v30 }
 0x151   :  { %v65_v33 = vrot.slane %v64_v32, 1 }
 0x153   :  { %v66_v35 = vadd.f32 %v65_v33, %v64_v32 }
 0x155   :  { %v67_v36 = vadd.f32 %v66_v35, %v60_v34 }
 0x157   :  { %69 = vst.msk [vmem:[#allocation2] sm:$0x1] %vm16_vm2, %v67_v36 }
 0x15e   :  { %v73_v37 = vld [vmem:[#allocation2] sm:$0x1] }
 0x15f   :  { %v75_v38 = vmul.f32 0.125, %v73_v37 }
 0x161   :  { %76 = vst.msk [vmem:[#allocation3] sm:$0x1] %vm16_vm2, %v75_v38 }
 0x162   :  { %110 = shalt.err (!%p107_p4)
}
 0x163   :  { %s111_s17 = scalar_lea.hbm %s168_s2, 16 }
 0x164   :  { %p112_p5 = scmp.ne.s32.totalorder %s168_s2, %s111_s17  ;;  %p115_p6 = scmp.lt.u32.totalorder %s111_s17, %s168_s2 }
 0x166   :  { %p117_p7 = pnand %p115_p6, %p112_p5 }
 0x168   :  { %120 = shalt.err (!%p117_p7)
}
 0x169   :  { %86 = dma.vmem_to_hbm [thread:$0]  %s84_s1, 16, %s168_s2, [#allocation4]  }
 0x16a   :  { %121 = dma.done.wait [#allocation4], 16  }
 0x16b   :  { %122 = vsyncadd [#allocation4], 4294967280 }
 0x16c   :  { %90 = vsyncpa [#allocation4], 1 }

</bundles_post_ra>
